<compile_context>
chip_gen: v6e
topology: v6e:2x2x1
jax: 0.10.0
libtpu: 0.0.40
codegen_flags: <defaults>
</compile_context>

<pallas_src>
import functools

import jax
import jax.numpy as jnp
from jax.experimental import pallas as pl
from jax.experimental.pallas import tpu as pltpu


def _round_up(x, m):
    return ((x + m - 1) // m) * m


# ----------------------------- kernels --------------------------------------
# Multi-K-step kernels (f32 VMEM accumulator, init/epilogue via pl.when).
def _orthfc_kernel_acc_bias(x_ref, w_ref, b_ref, o_ref, acc_ref):
    k = pl.program_id(2)

    @pl.when(k == 0)
    def _():
        acc_ref[...] = jnp.zeros_like(acc_ref)

    acc_ref[...] += jnp.dot(
        x_ref[...], w_ref[...], preferred_element_type=jnp.float32
    )

    @pl.when(k == pl.num_programs(2) - 1)
    def _():
        o_ref[...] = (acc_ref[...] + b_ref[...].astype(jnp.float32)).astype(
            o_ref.dtype
        )


def _orthfc_kernel_acc_nobias(x_ref, w_ref, o_ref, acc_ref):
    k = pl.program_id(2)

    @pl.when(k == 0)
    def _():
        acc_ref[...] = jnp.zeros_like(acc_ref)

    acc_ref[...] += jnp.dot(
        x_ref[...], w_ref[...], preferred_element_type=jnp.float32
    )

    @pl.when(k == pl.num_programs(2) - 1)
    def _():
        o_ref[...] = acc_ref[...].astype(o_ref.dtype)


# Single-K-step kernels (no accumulator scratch, no pl.when).
def _orthfc_kernel_bias(x_ref, w_ref, b_ref, o_ref):
    acc = jnp.dot(x_ref[...], w_ref[...], preferred_element_type=jnp.float32)
    o_ref[...] = (acc + b_ref[...].astype(jnp.float32)).astype(o_ref.dtype)


def _orthfc_kernel_nobias(x_ref, w_ref, o_ref):
    o_ref[...] = jnp.dot(
        x_ref[...], w_ref[...], preferred_element_type=jnp.float32
    ).astype(o_ref.dtype)


# ----------------------------- wrapper ---------------------------------------
@functools.partial(jax.jit, static_argnames=("tm", "tn", "tk", "cast_to_bf16"))
def orthfc_forward(x, w_t, b=None, *, tm=512, tn=512, tk=512, cast_to_bf16=False):
    """y = x @ w_t + b  with x:(B, D), w_t:(D, OUT), b:(OUT,) or None.

    Covers both ORTHFC branches: for dim_in >= dim_out (newLinear) pass the
    stored (in, out) weight directly; for dim_in < dim_out (nn.Linear) pass
    weight.T. Either way the math is y = x @ W_eff + b.
    """
    B, D = x.shape
    Dw, OUT = w_t.shape
    assert Dw == D
    has_bias = b is not None
    out_dtype = x.dtype

    if cast_to_bf16:
        x = x.astype(jnp.bfloat16)
        w_t = w_t.astype(jnp.bfloat16)
    in_dtype = x.dtype
    itemsize = jnp.dtype(in_dtype).itemsize
    out_itemsize = jnp.dtype(out_dtype).itemsize

    # ---- tile selection -----------------------------------------------------
    # When a dimension fits in one tile, use the full dim as the block shape:
    # that is always layout-legal (block == full array dim) for any B/OUT/D and
    # any dtype (avoids the f32/bf16/int8 sublane-rounding cliff), and it means
    # no padding at all on that axis. When tiled, tiles are 128-multiples and
    # ragged M/N edge blocks are masked by Pallas.
    tm = B if B <= tm else tm
    tn = OUT if OUT <= tn else tn

    if D <= tk:
        tk = D
        k_steps = 1
    else:
        k_steps = pl.cdiv(D, tk)
        tk = _round_up(pl.cdiv(D, k_steps), 128)  # minimize K padding waste
    Kp = tk * k_steps

    # Zero-pad ONLY the K tail (garbage K would feed the accumulator).
    if Kp != D:
        x = jnp.pad(x, ((0, 0), (0, Kp - D)))
        w_t = jnp.pad(w_t, ((0, Kp - D), (0, 0)))

    m_steps = pl.cdiv(B, tm)
    n_steps = pl.cdiv(OUT, tn)

    # v7x has 2 TensorCores: if the parallel grid collapsed to one block, split
    # N so both cores get work (no-op on v5e/v6e which have 1 TC).
    if m_steps * n_steps == 1 and OUT >= 256:
        tn = _round_up(pl.cdiv(OUT, 2), 128)
        n_steps = pl.cdiv(OUT, tn)

    args = [x, w_t]
    if has_bias:
        args.append(b.reshape(1, OUT))  # keep bias in its own (f32) dtype

    # ---- grid / specs ---------------------------------------------------------
    if k_steps == 1:
        grid = (m_steps, n_steps)
        in_specs = [
            pl.BlockSpec((tm, tk), lambda i, j: (i, 0)),
            pl.BlockSpec((tk, tn), lambda i, j: (0, j)),
        ]
        if has_bias:
            in_specs.append(pl.BlockSpec((1, tn), lambda i, j: (0, j)))
        out_spec = pl.BlockSpec((tm, tn), lambda i, j: (i, j))
        scratch = []
        dims = ("parallel", "parallel")
        kernel = _orthfc_kernel_bias if has_bias else _orthfc_kernel_nobias
    else:
        grid = (m_steps, n_steps, k_steps)
        in_specs = [
            pl.BlockSpec((tm, tk), lambda i, j, k: (i, k)),
            pl.BlockSpec((tk, tn), lambda i, j, k: (k, j)),
        ]
        if has_bias:
            in_specs.append(pl.BlockSpec((1, tn), lambda i, j, k: (0, j)))
        out_spec = pl.BlockSpec((tm, tn), lambda i, j, k: (i, j))
        scratch = [pltpu.VMEM((tm, tn), jnp.float32)]
        dims = ("parallel", "parallel", "arbitrary")
        kernel = (
            _orthfc_kernel_acc_bias if has_bias else _orthfc_kernel_acc_nobias
        )

    # ---- generation-aware VMEM limit ----------------------------------------
    try:
        vmem_cap = int(pltpu.get_tpu_info().vmem_capacity_bytes)
    except Exception:
        vmem_cap = 64 * 1024 * 1024  # conservative (v7x per-TC size)
    bias_bytes = (tn * jnp.dtype(b.dtype).itemsize) if has_bias else 0
    vmem_need = 2 * (
        tm * tk * itemsize + tk * tn * itemsize + bias_bytes + tm * tn * out_itemsize
    )
    if k_steps > 1:
        vmem_need += tm * tn * 4  # f32 accumulator scratch
    vmem_limit = int(
        min(max(2 * vmem_need, 16 * 1024 * 1024), (3 * vmem_cap) // 4)
    )

    # ---- cost estimate (accounts for operand re-streaming) -------------------
    cost = pl.CostEstimate(
        flops=2 * (m_steps * tm) * Kp * (n_steps * tn),
        transcendentals=0,
        bytes_accessed=int(
            B * Kp * itemsize * n_steps
            + Kp * OUT * itemsize * m_steps
            + B * OUT * out_itemsize
        ),
    )

    out = pl.pallas_call(
        kernel,
        out_shape=jax.ShapeDtypeStruct((B, OUT), out_dtype),
        grid_spec=pltpu.PrefetchScalarGridSpec(
            num_scalar_prefetch=0,
            grid=grid,
            in_specs=in_specs,
            out_specs=out_spec,
            scratch_shapes=scratch,
        ),
        compiler_params=pltpu.CompilerParams(
            dimension_semantics=dims,
            vmem_limit_bytes=vmem_limit,
        ),
        cost_estimate=cost,
    )(*args)
    return out


def init_orthfc_params(key, dim_in, dim_out, dtype=jnp.float32):
    """Deterministic params mimicking ORTHFC: (semi-)orthogonal weight + small bias.

    geotorch.orthogonal constrains weight:(dim_in, dim_out) to orthonormal
    columns; emulated here with a QR factorization of a Gaussian matrix.
    """
    # TODO(synk): geotorch's orthogonal parametrization (training-time manifold
    # constraint) has no Pallas equivalent; forward only consumes the weight.
    kw, kb = jax.random.split(key)
    a = jax.random.normal(kw, (dim_in, dim_out), jnp.float32)
    q, _ = jnp.linalg.qr(a)  # orthonormal columns (dim_in >= dim_out)
    bound = 1.0 / (dim_in ** 0.5)
    b = jax.random.uniform(kb, (dim_out,), jnp.float32, minval=-bound, maxval=bound)
    return q.astype(dtype), b.astype(dtype)


if __name__ == "__main__":
    key = jax.random.PRNGKey(0)
    k_x, k_p, k_x2, k_p2 = jax.random.split(key, 4)

    # --- test 1: dim_in >= dim_out (newLinear branch), single-K fast path ----
    batch, dim_in, dim_out = 8, 64, 32
    x = jax.random.normal(k_x, (batch, dim_in), jnp.float32)
    w_t, b = init_orthfc_params(k_p, dim_in, dim_out)

    y = orthfc_forward(x, w_t, b)
    jax.block_until_ready(y)
    y_ref = x @ w_t + b
    assert y.shape == (batch, dim_out)
    assert jnp.allclose(y, y_ref, atol=1e-5, rtol=1e-5)

    # --- test 2: force the multi-K accumulator path (K tiling + K zero-pad) --
    batch2, dim_in2, dim_out2 = 8, 300, 40
    x2 = jax.random.normal(k_x2, (batch2, dim_in2), jnp.float32)
    w_t2, b2 = init_orthfc_params(k_p2, dim_in2, dim_out2)
    y2 = orthfc_forward(x2, w_t2, b2, tk=128)
    jax.block_until_ready(y2)
    y2_ref = x2 @ w_t2 + b2
    assert jnp.allclose(y2, y2_ref, atol=1e-4, rtol=1e-4)

    # --- test 3: bias=None variant (bias-free kernel, no zero-bias DMA) ------
    y3 = orthfc_forward(x, w_t, None)
    jax.block_until_ready(y3)
    assert jnp.allclose(y3, x @ w_t, atol=1e-5, rtol=1e-5)

    # --- test 4: bf16 MXU path (f32 accumulation), loose tolerance -----------
    y4 = orthfc_forward(x, w_t, b, cast_to_bf16=True)
    jax.block_until_ready(y4)
    assert jnp.allclose(y4.astype(jnp.float32), y_ref, atol=5e-2, rtol=5e-2)

    print("KERNEL_OK")
</pallas_src>

<mosaic_0001>
module attributes {stable_mosaic.version = 11 : i64} {
  func.func @_orthfc_kernel_bias(%arg0: i32, %arg1: i32, %arg2: memref<8x64xf32, #tpu.memory_space<vmem>>, %arg3: memref<64x32xf32, #tpu.memory_space<vmem>>, %arg4: memref<1x32xf32, #tpu.memory_space<vmem>>, %arg5: memref<8x32xf32, #tpu.memory_space<vmem>>) attributes {dimension_semantics = [#tpu.dimension_semantics<parallel>, #tpu.dimension_semantics<parallel>], iteration_bounds = array<i64: 1, 1>, scalar_prefetch = 0 : i64, scratch_operands = 0 : i64, tpu.core_type = #tpu.core_type<tc>, window_params = [{transform_indices = @transform_0, window_bounds = array<i64: 8, 64>}, {transform_indices = @transform_1, window_bounds = array<i64: 64, 32>}, {transform_indices = @transform_2, window_bounds = array<i64: 1, 32>}, {transform_indices = @transform_3, window_bounds = array<i64: 8, 32>}]} {
    %c0 = arith.constant 0 : index
    %c0_0 = arith.constant 0 : index
    %0 = vector.load %arg2[%c0, %c0_0] : memref<8x64xf32, #tpu.memory_space<vmem>>, vector<8x64xf32>
    %c0_1 = arith.constant 0 : index
    %c0_2 = arith.constant 0 : index
    %1 = vector.load %arg3[%c0_1, %c0_2] : memref<64x32xf32, #tpu.memory_space<vmem>>, vector<64x32xf32>
    %cst = arith.constant dense<0.000000e+00> : vector<8x32xf32>
    %2 = tpu.matmul %0, %1, %cst {dimension_numbers = #tpu.dot_dimension_numbers<[1], [0], [0], [1], [0, 0, 1, 1], [], []>} : vector<8x64xf32>, vector<64x32xf32>, vector<8x32xf32> -> vector<8x32xf32>
    %c0_3 = arith.constant 0 : index
    %c0_4 = arith.constant 0 : index
    %3 = vector.load %arg4[%c0_3, %c0_4] : memref<1x32xf32, #tpu.memory_space<vmem>>, vector<1x32xf32>
    %4 = vector.broadcast %3 : vector<1x32xf32> to vector<8x32xf32>
    %5 = arith.addf %2, %4 : vector<8x32xf32>
    %c0_5 = arith.constant 0 : index
    %c0_6 = arith.constant 0 : index
    %6 = vector.load %arg5[%c0_5, %c0_6] : memref<8x32xf32, #tpu.memory_space<vmem>>, vector<8x32xf32>
    tpu.vector_store %arg5[%c0_5, %c0_6], %5 {strides = array<i32>} : memref<8x32xf32, #tpu.memory_space<vmem>>, vector<8x32xf32>,
    return
  }
  func.func @transform_0(%arg0: i32, %arg1: i32) -> (i32, i32) {
    %c0_i32 = arith.constant 0 : i32
    %c0_i32_0 = arith.constant 0 : i32
    return %arg0, %c0_i32 : i32, i32
  }
  func.func @transform_1(%arg0: i32, %arg1: i32) -> (i32, i32) {
    %c0_i32 = arith.constant 0 : i32
    %c0_i32_0 = arith.constant 0 : i32
    return %c0_i32, %arg1 : i32, i32
  }
  func.func @transform_2(%arg0: i32, %arg1: i32) -> (i32, i32) {
    %c0_i32 = arith.constant 0 : i32
    %c0_i32_0 = arith.constant 0 : i32
    return %c0_i32, %arg1 : i32, i32
  }
  func.func @transform_3(%arg0: i32, %arg1: i32) -> (i32, i32) {
    %c0_i32 = arith.constant 0 : i32
    return %arg0, %arg1 : i32, i32
  }
}

</mosaic_0001>

<bundles_post_ra>
// kernel: orthfc_forward.1
= control target key start
LH: loop header
LB: loop body
LE: loop exit
PB: predicated region body
PF: predicated region fallthrough
CT: control target
= control target key end

     0   :  { %v176_v1 = vmov 0.0   ;;  %vm177_vm0 = vmmov 0   ;;  %s232_s0 = inlined_call_operand.vmem [shape: f32[8,64], index: 0, kind: input, shape index: {}]   ;;  %s233_s1 = inlined_call_operand.vmem [shape: f32[64,32], index: 1, kind: input, shape index: {}]   ;;  %s234_s2 = inlined_call_operand.vmem [shape: f32[1,32], index: 2, kind: input, shape index: {}]   ;;  %s235_s3 = inlined_call_operand.hbm [shape: f32[8,32], index: 3, kind: output, shape index: {}]  }
   0x1   :  { %v23_v0 = vld [vmem:[%s233_s1 + $0x38] sm:$0xff]  ;;  %132 = vmatprep.subr.mxu0 %v176_v1  ;;  %v22_v2 = vld [vmem:[%s233_s1 + $0x30] sm:$0xff]  ;;  %148 = vmatprep.mubr.msk.f32.mxu0 %vm177_vm0, %v176_v1  ;;  %v21_v3 = vld [vmem:[%s233_s1 + $0x28] sm:$0xff] }
   0x2   :  { %133 = vmatpush3.msra.mxu0 %v23_v0 }
   0x3   :  { %134 = vmatprep.subr.mxu0 %v176_v1 }
   0x4   :  { %8 = vsyncpa [#allocation3], 0  ;;  %135 = vmatpush3.msra.mxu0 %v22_v2  ;;  %v20_v4 = vld [vmem:[%s233_s1 + $0x20] sm:$0xff]  ;;  %v19_v5 = vld [vmem:[%s233_s1 + $0x18] sm:$0xff]  ;;  %vm31_vm1 = vcmask 523264   ;;  %s178_s5 = smov [#allocation2]  }
   0x5   :  { %136 = vmatprep.subr.mxu0 %v176_v1  ;;  %v18_v6 = vld [vmem:[%s233_s1 + $0x10] sm:$0xff]  ;;  %v17_v7 = vld [vmem:[%s233_s1 + $0x8] sm:$0xff]  ;;  %v16_v8 = vld [vmem:[%s233_s1] sm:$0xff]  ;;  %s113_s6 = sshll.u32 %s178_s5, 4  ;;  %vm105_vm2 = vcmask 261120   ;;  %s114_s6 = int_to_ptr.vmem [resolvable:$true] %s113_s6 }
   0x6   :  { %137 = vmatpush3.msra.mxu0 %v21_v3  ;;  %v15_v9 = vld [vmem:[%s232_s0] sm:$0xff]  ;;  %s154_s1 = scalar_lea.vmem %s114_s6, 128  ;;  %p159_p1 = scmp.lt.s32.totalorder %s114_s6, %s114_s6 }
   0x7   :  { %138 = vmatprep.subr.mxu0 %v176_v1  ;;  %v121_v10 = vld [vmem:[%s234_s2] ss:$0 sm:$0xff]  ;;  %p155_p0 = scmp.ne.s32.totalorder %s114_s6, %s154_s1  ;;  %p160_p2 = scmp.lt.s32.totalorder %s154_s1, %s154_s1 }
   0x8   :  { %139 = vmatpush3.msra.mxu0 %v20_v4 }
   0x9   :  { %140 = vmatprep.subr.mxu0 %v176_v1  ;;  %p161_p3 = por %p160_p2, %p159_p1 }
   0xa   :  { %141 = vmatpush3.msra.mxu0 %v19_v5 }
   0xb   :  { %142 = vmatprep.subr.mxu0 %v176_v1  ;;  %p162_p4 = pnand %p161_p3, %p155_p0 }
   0xc   :  { %143 = vmatpush3.msra.mxu0 %v18_v6 }
   0xd   :  { %144 = vmatprep.subr.mxu0 %v176_v1 }
   0xe   :  { %145 = vmatpush3.msra.mxu0 %v17_v7 }
   0xf   :  { %146 = vmatprep.subr.mxu0 %v176_v1 }
  0x10   :  { %147 = vmatpush3.msra.mxu0 %v16_v8 }
  0x11   :  { %149 = vmatmul.mubr.msk.f32.vlgmr.msra.gmra.mxu0 %vm31_vm1, %v15_v9 }
  0xd1   :  { %v101_v11 = vpop.f32.mrf.mxu0 }
  0xd2   :  { %v102_v12 = vadd.f32 %v121_v10, %v101_v11 }
  0xd3   :  { %v150_v13 = vpop.f32.mrf.mxu0 }
  0xd4   :  { %106 = vst.msk [vmem:[#allocation2] sm:$0xff] %vm105_vm2, %v102_v12 }
  0xd5   :  { %165 = shalt.err (!%p162_p4)
}
  0xd6   :  { %116 = dma.vmem_to_hbm [thread:$0]  %s114_s6, 128, %s235_s3, [#allocation3]  }
  0xd7   :  { %174 = dma.done.wait [#allocation3], 128  }
  0xd8   :  { %175 = vsyncadd [#allocation3], 4294967168 }
  0xd9   :  { %120 = vsyncpa [#allocation3], 1 }

</bundles_post_ra>
